<compile_context>
chip_gen: v7x
topology: tpu7x:2x2x1
jax: 0.10.0
libtpu: 0.0.40
codegen_flags: <defaults>
</compile_context>

<pallas_src>
import functools

import jax
import jax.numpy as jnp
from jax.experimental import pallas as pl
from jax.experimental.pallas import tpu as pltpu


_BB = 8                                   # batch rows gathered per grid step (sublane-dense)
_RESIDENT_VMEM_BUDGET = 40 * 1024 * 1024  # conservative vs v7x's 64 MiB physical VMEM
_XLA_CUTOFF_BYTES = 256 * 1024            # below this, XLA's native gather beats kernel overhead


# ---------------------------------------------------------------------------
# Path A: tables resident in VMEM, in-kernel gather, packed lane-dense output.
# ---------------------------------------------------------------------------
def _resident_gather_kernel(idx_ref, c_tab_ref, h_tab_ref, out_ref, *, bb, lh):
    """Gather `bb` rows from each resident table; write one packed (bb, 2*lh) tile."""
    b0 = pl.program_id(0) * bb
    rows = []
    for i in range(bb):                      # bb is small and static (8)
        r = idx_ref[b0 + i]                  # SMEM scalar read (scalar prefetch)
        c_row = c_tab_ref[pl.ds(r, 1), :]    # (1, lh) dynamic sublane slice of VMEM-resident table
        h_row = h_tab_ref[pl.ds(r, 1), :]    # (1, lh)
        rows.append(jnp.concatenate([c_row, h_row], axis=-1))   # (1, 2*lh)
    # Single full-tile store: sublane-dense (bb=8 rows), lane-dense when lh % 64 == 0.
    out_ref[...] = jnp.concatenate(rows, axis=0)


def _forward_resident(idx, c_table, h_table):
    n_concepts, lh = c_table.shape
    batch = idx.shape[0]
    dtype = c_table.dtype
    itemsize = jnp.dtype(dtype).itemsize

    bb = _BB
    batch_p = pl.cdiv(batch, bb) * bb
    if batch_p != batch:
        idx = jnp.pad(idx, (0, batch_p - batch))  # pad with row 0 (valid); sliced off below

    table_bytes = n_concepts * lh * itemsize
    out_tile_bytes = bb * 2 * lh * itemsize
    # Budget: 2x tables (pipeline may still allocate double buffers even for
    # grid-invariant blocks) + double-buffered output tile + slack.
    vmem_needed = 2 * 2 * table_bytes + 2 * out_tile_bytes
    vmem_limit = max(vmem_needed + (2 << 20), 32 << 20)

    grid_spec = pltpu.PrefetchScalarGridSpec(
        num_scalar_prefetch=1,           # idx lives in SMEM
        grid=(batch_p // bb,),
        in_specs=[
            # Full tables, grid-invariant block index -> DMA'd once, stay resident.
            pl.BlockSpec((n_concepts, lh), lambda b, idx_ref: (0, 0)),
            pl.BlockSpec((n_concepts, lh), lambda b, idx_ref: (0, 0)),
        ],
        out_specs=pl.BlockSpec((bb, 2 * lh), lambda b, idx_ref: (b, 0)),
    )

    cost = pl.CostEstimate(
        flops=0,
        transcendentals=0,
        # idx read + tables streamed once + packed output written
        bytes_accessed=batch_p * 4 + 2 * table_bytes + batch_p * 2 * lh * itemsize,
    )

    packed = pl.pallas_call(
        functools.partial(_resident_gather_kernel, bb=bb, lh=lh),
        out_shape=jax.ShapeDtypeStruct((batch_p, 2 * lh), dtype),
        grid_spec=grid_spec,
        compiler_params=pltpu.CompilerParams(
            # NOTE: "parallel" vs "arbitrary" does not change codegen here and
            # does NOT shard across v7x's two TensorCores (that would need
            # CORE_PARALLEL / core_map); this op is overhead-bound, so we keep
            # it on a single core.
            dimension_semantics=("arbitrary",),
            vmem_limit_bytes=int(vmem_limit),
        ),
        cost_estimate=cost,
    )(idx, c_table, h_table)

    c_flat = packed[:batch, :lh]
    h_flat = packed[:batch, lh:]
    return c_flat, h_flat


# ---------------------------------------------------------------------------
# Path B (fallback, tables too large for VMEM): data-dependent BlockSpec gather.
# ---------------------------------------------------------------------------
def _row_gather_kernel(idx_ref, c_row_ref, h_row_ref, c_out_ref, h_out_ref):
    # idx_ref is consumed by the index_maps (data-dependent row DMA); the body
    # is a plain VMEM row copy.
    del idx_ref
    c_out_ref[...] = c_row_ref[...]
    h_out_ref[...] = h_row_ref[...]


def _forward_hbm_gather(idx, c_table, h_table):
    # TODO(synk): chunk the batch (8 rows/step) with manual pltpu.make_async_copy
    #             double-buffering; the one-row-per-step gather is kept here for
    #             simplicity since the resident path handles all realistic sizes.
    n_concepts, lh = c_table.shape
    batch = idx.shape[0]
    dtype = c_table.dtype
    itemsize = jnp.dtype(dtype).itemsize

    # View tables as (n_concepts, 1, LH): the gathered (1, 1, LH) block then has
    # its last two dims equal to the full array dims (always legal for any LH).
    c_tab3 = c_table.reshape(n_concepts, 1, lh)
    h_tab3 = h_table.reshape(n_concepts, 1, lh)

    cost = pl.CostEstimate(
        flops=0,
        transcendentals=0,
        bytes_accessed=batch * 4 + 4 * batch * lh * itemsize,
    )

    grid_spec = pltpu.PrefetchScalarGridSpec(
        num_scalar_prefetch=1,
        grid=(batch,),
        in_specs=[
            pl.BlockSpec((1, 1, lh), lambda b, idx_ref: (idx_ref[b], 0, 0)),
            pl.BlockSpec((1, 1, lh), lambda b, idx_ref: (idx_ref[b], 0, 0)),
        ],
        out_specs=[
            pl.BlockSpec((1, 1, lh), lambda b, idx_ref: (b, 0, 0)),
            pl.BlockSpec((1, 1, lh), lambda b, idx_ref: (b, 0, 0)),
        ],
    )

    c_flat, h_flat = pl.pallas_call(
        _row_gather_kernel,
        out_shape=(
            jax.ShapeDtypeStruct((batch, 1, lh), dtype),
            jax.ShapeDtypeStruct((batch, 1, lh), dtype),
        ),
        grid_spec=grid_spec,
        compiler_params=pltpu.CompilerParams(dimension_semantics=("arbitrary",)),
        cost_estimate=cost,
    )(idx, c_tab3, h_tab3)

    return c_flat.reshape(batch, lh), h_flat.reshape(batch, lh)


# ---------------------------------------------------------------------------
# Public forward (equivalent of OneHotContext._forward, eval mode).
# ---------------------------------------------------------------------------
def onehot_context_forward(x, c_table, h_table, nlayers, hidden_size, *, force_pallas=False):
    batch = x.shape[0]
    n_concepts, lh = c_table.shape
    assert lh == nlayers * hidden_size
    assert h_table.shape == (n_concepts, lh)
    assert c_table.dtype == h_table.dtype
    itemsize = jnp.dtype(c_table.dtype).itemsize

    # Clamp ids so a gather can never fetch an arbitrary (OOB) row.
    # NOTE: PyTorch nn.Embedding raises on OOB ids; clamping silently maps them
    # to row 0 / n_concepts-1 instead (documented deviation).
    idx = jnp.clip(x.astype(jnp.int32), 0, n_concepts - 1)

    moved_bytes = 2 * 2 * batch * lh * itemsize  # rows read + rows written, for c and h

    if not force_pallas and moved_bytes < _XLA_CUTOFF_BYTES:
        # Tiny op: pallas_call custom-call + grid overhead exceeds XLA's native gather.
        c_flat = c_table[idx]
        h_flat = h_table[idx]
    else:
        table_bytes = n_concepts * lh * itemsize
        resident_need = 2 * 2 * table_bytes + 2 * _BB * 2 * lh * itemsize
        if resident_need <= _RESIDENT_VMEM_BUDGET:
            c_flat, h_flat = _forward_resident(idx, c_table, h_table)
        else:
            c_flat, h_flat = _forward_hbm_gather(idx, c_table, h_table)

    # Glue identical to .reshape(batch, nlayers, hidden).transpose(0, 1).contiguous().
    # TODO(synk): fold this transpose into the out_spec when hidden_size % 128 == 0;
    #             for hidden_size < 128 (as here) it stays in XLA to keep stores lane-dense.
    c_init = jnp.transpose(c_flat.reshape(batch, nlayers, hidden_size), (1, 0, 2))
    h_init = jnp.transpose(h_flat.reshape(batch, nlayers, hidden_size), (1, 0, 2))
    # TODO(synk): training-mode dropout not implemented (identity / eval mode).
    return c_init, h_init


if __name__ == "__main__":
    # Small shapes consistent with the module.
    batch = 8
    nlayers = 2
    hidden_size = 32
    n_concepts = 16
    concept_size = 4  # unused by forward, kept for fidelity with __init__

    key = jax.random.PRNGKey(0)
    k_c, k_h, k_x = jax.random.split(key, 3)

    # Deterministic "Embedding" weights: (n_concepts, nlayers*hidden_size)
    c_table = jax.random.normal(k_c, (n_concepts, nlayers * hidden_size), jnp.float32)
    h_table = jax.random.normal(k_h, (n_concepts, nlayers * hidden_size), jnp.float32)

    # Input: batch of concept ids
    x = jax.random.randint(k_x, (batch,), 0, n_concepts, dtype=jnp.int32)

    # force_pallas=True: this config is below the XLA cutoff, but we want to
    # exercise the Pallas resident-table kernel itself.
    c_init, h_init = onehot_context_forward(
        x, c_table, h_table, nlayers, hidden_size, force_pallas=True)
    jax.block_until_ready((c_init, h_init))

    # Pure-JAX reference check (embedding lookup == gather)
    c_ref = jnp.transpose(c_table[x].reshape(batch, nlayers, hidden_size), (1, 0, 2))
    h_ref = jnp.transpose(h_table[x].reshape(batch, nlayers, hidden_size), (1, 0, 2))
    assert c_init.shape == (nlayers, batch, hidden_size)
    assert h_init.shape == (nlayers, batch, hidden_size)
    assert jnp.allclose(c_init, c_ref, atol=1e-6)
    assert jnp.allclose(h_init, h_ref, atol=1e-6)

    print("KERNEL_OK")
</pallas_src>

<mosaic_0001>
module attributes {stable_mosaic.version = 11 : i64} {
  func.func @_resident_gather_kernel(%arg0: i32, %arg1: memref<8xi32, #tpu.memory_space<smem>>, %arg2: memref<16x64xf32, #tpu.memory_space<vmem>>, %arg3: memref<16x64xf32, #tpu.memory_space<vmem>>, %arg4: memref<8x128xf32, #tpu.memory_space<vmem>>) attributes {dimension_semantics = [#tpu.dimension_semantics<arbitrary>], iteration_bounds = array<i64: 1>, scalar_prefetch = 1 : i64, scratch_operands = 0 : i64, tpu.core_type = #tpu.core_type<tc>, window_params = [{pipeline_mode = #tpu.pipeline_mode<synchronous>, transform_indices = @transform_0, window_bounds = array<i64: 16, 64>}, {pipeline_mode = #tpu.pipeline_mode<synchronous>, transform_indices = @transform_1, window_bounds = array<i64: 16, 64>}, {transform_indices = @transform_2, window_bounds = array<i64: 8, 128>}]} {
    %c8_i32 = arith.constant 8 : i32
    %0 = arith.muli %arg0, %c8_i32 : i32
    %c0_i32 = arith.constant 0 : i32
    %1 = arith.addi %0, %c0_i32 : i32
    %2 = arith.index_cast %1 : i32 to index
    %3 = memref.load %arg1[%2] : memref<8xi32, #tpu.memory_space<smem>>
    %4 = arith.index_cast %3 : i32 to index
    %c0 = arith.constant 0 : index
    %5 = vector.load %arg2[%4, %c0] : memref<16x64xf32, #tpu.memory_space<vmem>>, vector<1x64xf32>
    %6 = arith.index_cast %3 : i32 to index
    %c0_0 = arith.constant 0 : index
    %7 = vector.load %arg3[%6, %c0_0] : memref<16x64xf32, #tpu.memory_space<vmem>>, vector<1x64xf32>
    %8 = tpu.concatenate %5, %7 in 1 : vector<1x64xf32>, vector<1x64xf32> -> vector<1x128xf32>
    %c1_i32 = arith.constant 1 : i32
    %9 = arith.addi %0, %c1_i32 : i32
    %10 = arith.index_cast %9 : i32 to index
    %11 = memref.load %arg1[%10] : memref<8xi32, #tpu.memory_space<smem>>
    %12 = arith.index_cast %11 : i32 to index
    %c0_1 = arith.constant 0 : index
    %13 = vector.load %arg2[%12, %c0_1] : memref<16x64xf32, #tpu.memory_space<vmem>>, vector<1x64xf32>
    %14 = arith.index_cast %11 : i32 to index
    %c0_2 = arith.constant 0 : index
    %15 = vector.load %arg3[%14, %c0_2] : memref<16x64xf32, #tpu.memory_space<vmem>>, vector<1x64xf32>
    %16 = tpu.concatenate %13, %15 in 1 : vector<1x64xf32>, vector<1x64xf32> -> vector<1x128xf32>
    %c2_i32 = arith.constant 2 : i32
    %17 = arith.addi %0, %c2_i32 : i32
    %18 = arith.index_cast %17 : i32 to index
    %19 = memref.load %arg1[%18] : memref<8xi32, #tpu.memory_space<smem>>
    %20 = arith.index_cast %19 : i32 to index
    %c0_3 = arith.constant 0 : index
    %21 = vector.load %arg2[%20, %c0_3] : memref<16x64xf32, #tpu.memory_space<vmem>>, vector<1x64xf32>
    %22 = arith.index_cast %19 : i32 to index
    %c0_4 = arith.constant 0 : index
    %23 = vector.load %arg3[%22, %c0_4] : memref<16x64xf32, #tpu.memory_space<vmem>>, vector<1x64xf32>
    %24 = tpu.concatenate %21, %23 in 1 : vector<1x64xf32>, vector<1x64xf32> -> vector<1x128xf32>
    %c3_i32 = arith.constant 3 : i32
    %25 = arith.addi %0, %c3_i32 : i32
    %26 = arith.index_cast %25 : i32 to index
    %27 = memref.load %arg1[%26] : memref<8xi32, #tpu.memory_space<smem>>
    %28 = arith.index_cast %27 : i32 to index
    %c0_5 = arith.constant 0 : index
    %29 = vector.load %arg2[%28, %c0_5] : memref<16x64xf32, #tpu.memory_space<vmem>>, vector<1x64xf32>
    %30 = arith.index_cast %27 : i32 to index
    %c0_6 = arith.constant 0 : index
    %31 = vector.load %arg3[%30, %c0_6] : memref<16x64xf32, #tpu.memory_space<vmem>>, vector<1x64xf32>
    %32 = tpu.concatenate %29, %31 in 1 : vector<1x64xf32>, vector<1x64xf32> -> vector<1x128xf32>
    %c4_i32 = arith.constant 4 : i32
    %33 = arith.addi %0, %c4_i32 : i32
    %34 = arith.index_cast %33 : i32 to index
    %35 = memref.load %arg1[%34] : memref<8xi32, #tpu.memory_space<smem>>
    %36 = arith.index_cast %35 : i32 to index
    %c0_7 = arith.constant 0 : index
    %37 = vector.load %arg2[%36, %c0_7] : memref<16x64xf32, #tpu.memory_space<vmem>>, vector<1x64xf32>
    %38 = arith.index_cast %35 : i32 to index
    %c0_8 = arith.constant 0 : index
    %39 = vector.load %arg3[%38, %c0_8] : memref<16x64xf32, #tpu.memory_space<vmem>>, vector<1x64xf32>
    %40 = tpu.concatenate %37, %39 in 1 : vector<1x64xf32>, vector<1x64xf32> -> vector<1x128xf32>
    %c5_i32 = arith.constant 5 : i32
    %41 = arith.addi %0, %c5_i32 : i32
    %42 = arith.index_cast %41 : i32 to index
    %43 = memref.load %arg1[%42] : memref<8xi32, #tpu.memory_space<smem>>
    %44 = arith.index_cast %43 : i32 to index
    %c0_9 = arith.constant 0 : index
    %45 = vector.load %arg2[%44, %c0_9] : memref<16x64xf32, #tpu.memory_space<vmem>>, vector<1x64xf32>
    %46 = arith.index_cast %43 : i32 to index
    %c0_10 = arith.constant 0 : index
    %47 = vector.load %arg3[%46, %c0_10] : memref<16x64xf32, #tpu.memory_space<vmem>>, vector<1x64xf32>
    %48 = tpu.concatenate %45, %47 in 1 : vector<1x64xf32>, vector<1x64xf32> -> vector<1x128xf32>
    %c6_i32 = arith.constant 6 : i32
    %49 = arith.addi %0, %c6_i32 : i32
    %50 = arith.index_cast %49 : i32 to index
    %51 = memref.load %arg1[%50] : memref<8xi32, #tpu.memory_space<smem>>
    %52 = arith.index_cast %51 : i32 to index
    %c0_11 = arith.constant 0 : index
    %53 = vector.load %arg2[%52, %c0_11] : memref<16x64xf32, #tpu.memory_space<vmem>>, vector<1x64xf32>
    %54 = arith.index_cast %51 : i32 to index
    %c0_12 = arith.constant 0 : index
    %55 = vector.load %arg3[%54, %c0_12] : memref<16x64xf32, #tpu.memory_space<vmem>>, vector<1x64xf32>
    %56 = tpu.concatenate %53, %55 in 1 : vector<1x64xf32>, vector<1x64xf32> -> vector<1x128xf32>
    %c7_i32 = arith.constant 7 : i32
    %57 = arith.addi %0, %c7_i32 : i32
    %58 = arith.index_cast %57 : i32 to index
    %59 = memref.load %arg1[%58] : memref<8xi32, #tpu.memory_space<smem>>
    %60 = arith.index_cast %59 : i32 to index
    %c0_13 = arith.constant 0 : index
    %61 = vector.load %arg2[%60, %c0_13] : memref<16x64xf32, #tpu.memory_space<vmem>>, vector<1x64xf32>
    %62 = arith.index_cast %59 : i32 to index
    %c0_14 = arith.constant 0 : index
    %63 = vector.load %arg3[%62, %c0_14] : memref<16x64xf32, #tpu.memory_space<vmem>>, vector<1x64xf32>
    %64 = tpu.concatenate %61, %63 in 1 : vector<1x64xf32>, vector<1x64xf32> -> vector<1x128xf32>
    %65 = tpu.concatenate %8, %16, %24, %32, %40, %48, %56, %64 in 0 : vector<1x128xf32>, vector<1x128xf32>, vector<1x128xf32>, vector<1x128xf32>, vector<1x128xf32>, vector<1x128xf32>, vector<1x128xf32>, vector<1x128xf32> -> vector<8x128xf32>
    %c0_15 = arith.constant 0 : index
    %c0_16 = arith.constant 0 : index
    %66 = vector.load %arg4[%c0_15, %c0_16] : memref<8x128xf32, #tpu.memory_space<vmem>>, vector<8x128xf32>
    tpu.vector_store %arg4[%c0_15, %c0_16], %65 {strides = array<i32>} : memref<8x128xf32, #tpu.memory_space<vmem>>, vector<8x128xf32>,
    return
  }
  func.func @transform_0(%arg0: i32, %arg1: memref<8xi32, #tpu.memory_space<smem>>) -> (i32, i32) {
    %c0_i32 = arith.constant 0 : i32
    %c0_i32_0 = arith.constant 0 : i32
    %c0_i32_1 = arith.constant 0 : i32
    return %c0_i32, %c0_i32_0 : i32, i32
  }
  func.func @transform_1(%arg0: i32, %arg1: memref<8xi32, #tpu.memory_space<smem>>) -> (i32, i32) {
    %c0_i32 = arith.constant 0 : i32
    %c0_i32_0 = arith.constant 0 : i32
    %c0_i32_1 = arith.constant 0 : i32
    return %c0_i32, %c0_i32_0 : i32, i32
  }
  func.func @transform_2(%arg0: i32, %arg1: memref<8xi32, #tpu.memory_space<smem>>) -> (i32, i32) {
    %c0_i32 = arith.constant 0 : i32
    %c0_i32_0 = arith.constant 0 : i32
    return %arg0, %c0_i32 : i32, i32
  }
}

</mosaic_0001>

<bundles_post_ra>
// kernel: tpu_custom_call.1
= control target key start
LH: loop header
LB: loop body
LE: loop exit
PB: predicated region body
PF: predicated region fallthrough
CT: control target
= control target key end

     0   :  { %s415_s0 = inlined_call_operand.hbm [shape: s32[8], index: 0, kind: input, shape index: {}]   ;;  %s416_s1 = inlined_call_operand.hbm [shape: f32[16,64], index: 1, kind: input, shape index: {}]   ;;  %s417_s2 = inlined_call_operand.hbm [shape: f32[16,64], index: 2, kind: input, shape index: {}]   ;;  %s418_s3 = inlined_call_operand.hbm [shape: f32[8,128], index: 3, kind: output, shape index: {}]  }
   0x1   :  { %s216_s14 = scalar_lea.hbm %s415_s0, 16 }
   0x2   :  { %p217_p0 = scmp.ne.s32.totalorder %s415_s0, %s216_s14  ;;  %p220_p1 = scmp.lt.u32.totalorder %s216_s14, %s415_s0 }
   0x4   :  { %p222_p2 = pnand %p220_p1, %p217_p0 }
   0x6   :  { %225 = shalt.err (!%p222_p2)  }
   0x7   :  { %s300_s19 = smov [#allocation3]  }
   0x8   :  { %9 = dma.hbm_to_smem %s415_s0, 16, %s300_s19, [#allocation2] }
   0x9   :  { %292 = dma.done.wait [#allocation2], 16 }
   0xa   :  { %293 = vsyncadd [#allocation2], 4294967280 }
   0xb   :  { %11 = sfence }
   0xc   :  { %12 = vsyncpa [#allocation5], 0 }
   0xd   :  { %13 = vsyncpa [#allocation8], 0 }
   0xe   :  { %14 = vsyncpa [#allocation6], 0  ;;  %s301_s22 = smov [#allocation4]   ;;  %s226_s26 = scalar_lea.hbm %s416_s1, 256 }
   0xf   :  { %s20_s23 = sshll.u32 %s301_s22, 4  ;;  %p227_p3 = scmp.ne.s32.totalorder %s416_s1, %s226_s26  ;;  %s21_s23 = int_to_ptr.vmem [resolvable:$true] %s20_s23 }
  0x10   :  { %p230_p4 = scmp.lt.u32.totalorder %s226_s26, %s416_s1 }
  0x12   :  { %p232_p5 = pnand %p230_p4, %p227_p3 }
  0x14   :  { %235 = shalt.err (!%p232_p5)
}
  0x15   :  { %s236_s0 = scalar_lea.vmem %s21_s23, 256  ;;  %p241_p7 = scmp.lt.s32.totalorder %s21_s23, %s21_s23 }
  0x16   :  { %p237_p6 = scmp.ne.s32.totalorder %s21_s23, %s236_s0  ;;  %p242_p8 = scmp.lt.s32.totalorder %s236_s0, %s236_s0 }
  0x18   :  { %p243_p9 = por %p242_p8, %p241_p7 }
  0x1a   :  { %p244_p10 = pnand %p243_p9, %p237_p6 }
  0x1c   :  { %247 = shalt.err (!%p244_p10)
}
  0x1d   :  { %s302_s4 = smov 128   ;;  %s303_s5 = smov 8  }
  0x1e   :  { %26 = dma.hbm_to_vmem [thread:$0]  %s416_s1, 256, %s21_s23, [#allocation5], %s302_s4, %s302_s4, %s303_s5  }
  0x1f   :  { %s304_s8 = smov [#allocation7]   ;;  %s248_s12 = scalar_lea.hbm %s417_s2, 256 }
  0x20   :  { %s32_s9 = sshll.u32 %s304_s8, 4  ;;  %p249_p11 = scmp.ne.s32.totalorder %s417_s2, %s248_s12  ;;  %s33_s9 = int_to_ptr.vmem [resolvable:$true] %s32_s9 }
  0x21   :  { %p252_p12 = scmp.lt.u32.totalorder %s248_s12, %s417_s2 }
  0x23   :  { %p254_p13 = pnand %p252_p12, %p249_p11 }
  0x25   :  { %257 = shalt.err (!%p254_p13)
}
  0x26   :  { %s258_s17 = scalar_lea.vmem %s33_s9, 256  ;;  %p263_p1 = scmp.lt.s32.totalorder %s33_s9, %s33_s9 }
  0x27   :  { %p259_p0 = scmp.ne.s32.totalorder %s33_s9, %s258_s17  ;;  %p264_p2 = scmp.lt.s32.totalorder %s258_s17, %s258_s17 }
  0x29   :  { %p265_p3 = por %p264_p2, %p263_p1 }
  0x2b   :  { %p266_p4 = pnand %p265_p3, %p259_p0 }
  0x2d   :  { %269 = shalt.err (!%p266_p4)
}
  0x2e   :  { %38 = dma.hbm_to_vmem [thread:$0]  %s417_s2, 256, %s33_s9, [#allocation8], %s302_s4, %s302_s4, %s303_s5  }
  0x2f   :  { %294 = dma.done.wait [#allocation5], 256  }
  0x30   :  { %295 = vsyncadd [#allocation5], 4294967040 }
  0x31   :  { %296 = dma.done.wait [#allocation8], 256  }
  0x32   :  { %297 = vsyncadd [#allocation8], 4294967040  ;;  %s363_s19 = sld [smem:[#allocation3 + $0x1]]  ;;  %s365_s20 = sld [smem:[#allocation3]]  ;;  %vm55_vm0 = vcmask 523264   ;;  %vm155_vm1 = vcmask 1040384  }
  0x33   :  { %s367_s21 = sld [smem:[#allocation3 + $0x2]]  ;;  %s369_s22 = sld [smem:[#allocation3 + $0x3]]  ;;  %vm157_vm2 = vcmask 1041408   ;;  %vm159_vm3 = vcmask 1042432   ;;  %vm161_vm4 = vcmask 1043456   ;;  %vm163_vm5 = vcmask 1044480  }
  0x34   :  { %s371_s23 = sld [smem:[#allocation3 + $0x4]]  ;;  %s373_s24 = sld [smem:[#allocation3 + $0x5]]  ;;  %vm165_vm6 = vcmask 1045504   ;;  %vm167_vm7 = vcmask 1046528  }
  0x35   :  { %s375_s2 = sld [smem:[#allocation3 + $0x6]]  ;;  %s377_s25 = sld [smem:[#allocation3 + $0x7]] }
  0x36   :  { %s305_s28 = smov 64   ;;  %s306_s15 = smov [#allocation9]  }
  0x37   :  { %s176_s16 = sshll.u32 %s306_s15, 4  ;;  %s177_s16 = int_to_ptr.vmem [resolvable:$true] %s176_s16 }
  0x38   :  { %s61_s26 = scalar_lea.vmem [#allocation7], %s363_s19  ;;  %s49_s27 = scalar_lea.vmem [#allocation7], %s365_s20 }
  0x39   :  { %v62_v0 = vld [vmem:[%s61_s26] sm:$0x1]  ;;  %s72_s29 = scalar_lea.vmem [#allocation7], %s367_s21  ;;  %s83_s30 = scalar_lea.vmem [#allocation7], %s369_s22 }
  0x3a   :  { %v50_v1 = vld [vmem:[%s49_s27] sm:$0x1]  ;;  %64 = vrot.lane.b32.xlu0 %v62_v0, %s305_s28  ;;  %s94_s0 = scalar_lea.vmem [#allocation7], %s371_s23  ;;  %s105_s4 = scalar_lea.vmem [#allocation7], %s373_s24 }
  0x3b   :  { %52 = vrot.lane.b32.xlu1 %v50_v1, %s305_s28  ;;  %v73_v2 = vld [vmem:[%s72_s29] sm:$0x1]  ;;  %s116_s5 = scalar_lea.vmem [#allocation7], %s375_s2  ;;  %s127_s6 = scalar_lea.vmem [#allocation7], %s377_s25 }
  0x3c   :  { %v84_v3 = vld [vmem:[%s83_s30] sm:$0x1]  ;;  %s59_s7 = scalar_lea.vmem [#allocation4], %s363_s19  ;;  %s47_s8 = scalar_lea.vmem [#allocation4], %s365_s20 }
  0x3d   :  { %v95_v4 = vld [vmem:[%s94_s0] sm:$0x1]  ;;  %s70_s9 = scalar_lea.vmem [#allocation4], %s367_s21  ;;  %s81_s10 = scalar_lea.vmem [#allocation4], %s369_s22 }
  0x3e   :  { %75 = vrot.lane.b32.xlu0 %v73_v2, %s305_s28  ;;  %v106_v5 = vld [vmem:[%s105_s4] sm:$0x1]  ;;  %s92_s11 = scalar_lea.vmem [#allocation4], %s371_s23  ;;  %s103_s12 = scalar_lea.vmem [#allocation4], %s373_s24 }
  0x3f   :  { %86 = vrot.lane.b32.xlu1 %v84_v3, %s305_s28  ;;  %v117_v6 = vld [vmem:[%s116_s5] sm:$0x1]  ;;  %s114_s13 = scalar_lea.vmem [#allocation4], %s375_s2  ;;  %s125_s14 = scalar_lea.vmem [#allocation4], %s377_s25 }
  0x40   :  { %v128_v7 = vld [vmem:[%s127_s6] sm:$0x1]  ;;  %s270_s17 = scalar_lea.vmem %s177_s16, 128  ;;  %p275_p6 = scmp.lt.s32.totalorder %s177_s16, %s177_s16 }
  0x41   :  { %v60_v8 = vld [vmem:[%s59_s7] sm:$0x1]  ;;  %p271_p5 = scmp.ne.s32.totalorder %s177_s16, %s270_s17  ;;  %p276_p7 = scmp.lt.s32.totalorder %s270_s17, %s270_s17 }
  0x42   :  { %97 = vrot.lane.b32.xlu0 %v95_v4, %s305_s28  ;;  %v48_v9 = vld [vmem:[%s47_s8] sm:$0x1] }
  0x43   :  { %108 = vrot.lane.b32.xlu1 %v106_v5, %s305_s28  ;;  %v71_v15 = vld [vmem:[%s70_s9] sm:$0x1]  ;;  %p277_p8 = por %p276_p7, %p275_p6 }
  0x44   :  { %v82_v16 = vld [vmem:[%s81_s10] sm:$0x1] }
  0x45   :  { %v93_v22 = vld [vmem:[%s92_s11] sm:$0x1]  ;;  %p278_p9 = pnand %p277_p8, %p271_p5 }
  0x46   :  { %119 = vrot.lane.b32.xlu0 %v117_v6, %s305_s28  ;;  %v104_v25 = vld [vmem:[%s103_s12] sm:$0x1] }
  0x47   :  { %130 = vrot.lane.b32.xlu1 %v128_v7, %s305_s28  ;;  %v115_v32 = vld [vmem:[%s114_s13] sm:$0x1] }
  0x48   :  { %v126_v35 = vld [vmem:[%s125_s14] sm:$0x1] }
  0xac   :  { %v65_v10 = vpop.permute.xlu0 %64 }
  0xad   :  { %v53_v11 = vpop.permute.xlu1 %52  ;;  %v67_v12 = vsel %vm55_vm0, %v60_v8, %v65_v10 }
  0xae   :  { %v56_v13 = vsel %vm55_vm0, %v48_v9, %v53_v11  ;;  %v135_v14 = vrot.slane %v67_v12, 7 }
  0xb0   :  { %v156_v17 = vsel %vm155_vm1, %v56_v13, %v135_v14  ;;  %v76_v18 = vpop.permute.xlu0 %75 }
  0xb1   :  { %v87_v19 = vpop.permute.xlu1 %86  ;;  %v78_v20 = vsel %vm55_vm0, %v71_v15, %v76_v18 }
  0xb2   :  { %v89_v21 = vsel %vm55_vm0, %v82_v16, %v87_v19  ;;  %v138_v23 = vrot.slane %v78_v20, 6 }
  0xb3   :  { %v141_v24 = vrot.slane %v89_v21, 5 }
  0xb4   :  { %v158_v26 = vsel %vm157_vm2, %v156_v17, %v138_v23  ;;  %v98_v27 = vpop.permute.xlu0 %97 }
  0xb5   :  { %v109_v28 = vpop.permute.xlu1 %108  ;;  %v160_v29 = vsel %vm159_vm3, %v158_v26, %v141_v24  ;;  %v100_v30 = vsel %vm55_vm0, %v93_v22, %v98_v27 }
  0xb6   :  { %v111_v31 = vsel %vm55_vm0, %v104_v25, %v109_v28  ;;  %v144_v33 = vrot.slane %v100_v30, 4 }
  0xb7   :  { %v147_v34 = vrot.slane %v111_v31, 3 }
  0xb8   :  { %v162_v36 = vsel %vm161_vm4, %v160_v29, %v144_v33  ;;  %v120_v37 = vpop.permute.xlu0 %119 }
  0xb9   :  { %v131_v38 = vpop.permute.xlu1 %130  ;;  %v164_v39 = vsel %vm163_vm5, %v162_v36, %v147_v34  ;;  %v122_v40 = vsel %vm55_vm0, %v115_v32, %v120_v37 }
  0xba   :  { %v133_v41 = vsel %vm55_vm0, %v126_v35, %v131_v38  ;;  %v150_v42 = vrot.slane %v122_v40, 2 }
  0xbb   :  { %v153_v43 = vrot.slane %v133_v41, 1 }
  0xbc   :  { %v166_v44 = vsel %vm165_vm6, %v164_v39, %v150_v42 }
  0xbd   :  { %v168_v45 = vsel %vm167_vm7, %v166_v44, %v153_v43 }
  0xbe   :  { %169 = vst [vmem:[#allocation9] sm:$0xff] %v168_v45 }
  0xbf   :  { %281 = shalt.err (!%p278_p9)
}
  0xc0   :  { %s282_s19 = scalar_lea.hbm %s418_s3, 128 }
  0xc1   :  { %p283_p10 = scmp.ne.s32.totalorder %s418_s3, %s282_s19  ;;  %p286_p11 = scmp.lt.u32.totalorder %s282_s19, %s418_s3 }
  0xc3   :  { %p288_p12 = pnand %p286_p11, %p283_p10 }
  0xc5   :  { %291 = shalt.err (!%p288_p12)
}
  0xc6   :  { %179 = dma.vmem_to_hbm [thread:$0]  %s177_s16, 128, %s418_s3, [#allocation6]  }
  0xc7   :  { %298 = dma.done.wait [#allocation6], 128  }
  0xc8   :  { %299 = vsyncadd [#allocation6], 4294967168 }
  0xc9   :  { %183 = vsyncpa [#allocation5], 1 }
  0xca   :  { %184 = vsyncpa [#allocation8], 1 }
  0xcb   :  { %185 = vsyncpa [#allocation6], 1 }

</bundles_post_ra>
